<compile_context>
chip_gen: v5e
topology: v5e:2x2
jax: 0.10.0
libtpu: 0.0.40
codegen_flags: <defaults>
</compile_context>

<pallas_src>
import functools
import math

import jax
import jax.numpy as jnp
from jax.experimental import pallas as pl
from jax.experimental.pallas import tpu as pltpu

NUM_EXTRACTED_FEATURES = {"vrtx": 9, "acos": 3, "norm": 3, "area": 1}

# TODO(synk): the reference `quantize` helper is not shown in the spec; we assume uniform
# binning of [low, high] into num_bins buckets with clipping, high_low == (low, high).
FEATURE_CONFIGS = {
    "vrtx": {"num_bins": 128, "embedding_dim": 8, "high_low": (-1.0, 1.0)},
    "acos": {"num_bins": 64, "embedding_dim": 8, "high_low": (0.0, math.pi)},
    "norm": {"num_bins": 64, "embedding_dim": 8, "high_low": (-1.0, 1.0)},
    "area": {"num_bins": 64, "embedding_dim": 8, "high_low": (0.0, 2.0)},
}

VMEM_LIMIT_BYTES = 48 * 1024 * 1024  # <= 64 MiB (v7x), lifts the 16/32 MiB scoped default


# ----------------------------------------------------------------------------- helpers
def _round_up(n, m):
    return ((n + m - 1) // m) * m


def _pick_tile(n_pad, prefs):
    for t in prefs:
        if t <= n_pad and n_pad % t == 0:
            return t
    return n_pad


def _compiler_params(dim_sem):
    return pltpu.CompilerParams(
        dimension_semantics=dim_sem, vmem_limit_bytes=VMEM_LIMIT_BYTES
    )


def _quantize_jnp(x, low, high, num_bins):
    idx = jnp.floor((x - low) / (high - low) * num_bins)
    return jnp.clip(idx, 0, num_bins - 1).astype(jnp.int32)


def _erf_approx(x):
    # Abramowitz & Stegun 7.1.26 (|abs err| < 1.5e-7): exact-erf semantics at f32.
    a1, a2, a3, a4, a5 = 0.254829592, -0.284496736, 1.421413741, -1.453152027, 1.061405429
    p = 0.3275911
    s = jnp.where(x >= 0.0, 1.0, -1.0)
    ax = jnp.abs(x)
    t = 1.0 / (1.0 + p * ax)
    poly = ((((a5 * t + a4) * t + a3) * t + a2) * t + a1) * t
    return s * (1.0 - poly * jnp.exp(-ax * ax))


def _gelu_erf(x):
    # torch.nn.GELU() (exact, erf-based)
    return 0.5 * x * (1.0 + _erf_approx(x * 0.7071067811865476))


# ----------------------------------------------------------------------------- kernels
def feature_kernel(coords_ref, qint_ref, cos_ref, *, cfg):
    """Lane-dense geometry features.

    coords_ref: [9, n]  rows = [v0x v0y v0z v1x v1y v1z v2x v2y v2z], lanes = faces.
    qint_ref  : [13, n] int32 rows = [norm(3), area(1), vrtx(9)] quantized bins.
    cos_ref   : [3, n]  f32 cosine similarities (arccos + quantize done in glue).
    """
    c = coords_ref[...]

    def row(i):
        return c[i:i + 1, :]

    v0 = (row(0), row(1), row(2))
    v1 = (row(3), row(4), row(5))
    v2 = (row(6), row(7), row(8))

    # torch.roll(coords, 1, dims=2) -> shifts = [v2, v0, v1]; e1 = v0 - v2, e2 = v1 - v0
    e1 = tuple(a - b for a, b in zip(v0, v2))
    e2 = tuple(a - b for a, b in zip(v1, v0))

    cx = e1[1] * e2[2] - e1[2] * e2[1]
    cy = e1[2] * e2[0] - e1[0] * e2[2]
    cz = e1[0] * e2[1] - e1[1] * e2[0]
    cnorm = jnp.sqrt(cx * cx + cy * cy + cz * cz)
    inv = 1.0 / jnp.maximum(cnorm, 1e-12)          # F.normalize eps=1e-12
    area = cnorm * 0.5

    def dot3(a, b):
        return a[0] * b[0] + a[1] * b[1] + a[2] * b[2]

    w0, w1, w2 = dot3(v0, v0), dot3(v1, v1), dot3(v2, v2)
    eps = 1e-8                                     # F.cosine_similarity eps
    cos0 = dot3(v0, v2) / jnp.maximum(jnp.sqrt(w0 * w2), eps)
    cos1 = dot3(v1, v0) / jnp.maximum(jnp.sqrt(w1 * w0), eps)
    cos2 = dot3(v2, v1) / jnp.maximum(jnp.sqrt(w2 * w1), eps)
    cos_ref[0:1, :] = cos0
    cos_ref[1:2, :] = cos1
    cos_ref[2:3, :] = cos2

    def quant(x, name):
        low, high = cfg[name]["high_low"]
        return _quantize_jnp(x, low, high, cfg[name]["num_bins"])

    qint_ref[0:1, :] = quant(cx * inv, "norm")
    qint_ref[1:2, :] = quant(cy * inv, "norm")
    qint_ref[2:3, :] = quant(cz * inv, "norm")
    qint_ref[3:4, :] = quant(area, "area")
    qint_ref[4:13, :] = quant(c, "vrtx")


def linear_gelu_kernel(x_ref, w_ref, b_ref, o_ref):
    """proj_in: Linear + exact GELU fused (row-tiled)."""
    y = jnp.dot(x_ref[...], w_ref[...], preferred_element_type=jnp.float32) + b_ref[...]
    o_ref[...] = _gelu_erf(y)


def project_relu_kernel(x_ref, w_ref, b_ref, o_ref):
    """SAGEConv project=True: h_j = relu(lin(x_j)), emitted in bf16 for aggregation."""
    y = jnp.dot(x_ref[...], w_ref[...], preferred_element_type=jnp.float32) + b_ref[...]
    o_ref[...] = jnp.maximum(y, 0.0).astype(o_ref.dtype)


def sage_agg_kernel(a_ref, h_ref, x_ref, wl_ref, bl_ref, wr_ref, g_ref, b_ref,
                    o_ref, acc_ref, *, activate):
    """Tiled mean aggregation msg = A @ h with fused SAGEConv output epilogue.

    grid = (row tiles, k tiles). Accumulate in f32 scratch; at the last k block apply
    lin_l / lin_r, L2 normalize, and (first layer only) GELU + LayerNorm.
    """
    k = pl.program_id(1)

    @pl.when(k == 0)
    def _():
        acc_ref[...] = jnp.zeros_like(acc_ref)

    # bf16 x bf16 -> f32 accumulate on the MXU
    acc_ref[...] += jnp.dot(a_ref[...], h_ref[...], preferred_element_type=jnp.float32)

    @pl.when(k == pl.num_programs(1) - 1)
    def _():
        x = x_ref[...]
        out = (
            jnp.dot(acc_ref[...], wl_ref[...], preferred_element_type=jnp.float32)
            + bl_ref[...]
            + jnp.dot(x, wr_ref[...], preferred_element_type=jnp.float32)
        )
        # normalize=True -> F.normalize(out, p=2, dim=-1), eps=1e-12
        nrm = jnp.sqrt(jnp.sum(out * out, axis=-1, keepdims=True))
        out = out / jnp.maximum(nrm, 1e-12)
        if activate:
            # sageconv_activate = GELU + LayerNorm, fused into the epilogue
            out = _gelu_erf(out)
            mu = jnp.mean(out, axis=-1, keepdims=True)
            var = jnp.mean((out - mu) ** 2, axis=-1, keepdims=True)
            out = (out - mu) * jax.lax.rsqrt(var + 1e-5) * g_ref[...] + b_ref[...]
        o_ref[...] = out


# ----------------------------------------------------------------------------- wrappers
def extract_features_call(coords_t, cfgs, n_pad):
    ft = _pick_tile(n_pad, (1024, 512, 256, 128))
    return pl.pallas_call(
        functools.partial(feature_kernel, cfg=cfgs),
        grid=(n_pad // ft,),
        in_specs=[pl.BlockSpec((9, ft), lambda j: (0, j))],
        out_specs=[pl.BlockSpec((13, ft), lambda j: (0, j)),
                   pl.BlockSpec((3, ft), lambda j: (0, j))],
        out_shape=(jax.ShapeDtypeStruct((13, n_pad), jnp.int32),
                   jax.ShapeDtypeStruct((3, n_pad), jnp.float32)),
        compiler_params=_compiler_params(("parallel",)),
    )(coords_t)


def _row_tiled_linear_call(kernel, x, w, b, tm, out_dtype):
    n_pad, f_in = x.shape
    h = w.shape[1]
    return pl.pallas_call(
        kernel,
        grid=(n_pad // tm,),
        in_specs=[pl.BlockSpec((tm, f_in), lambda i: (i, 0)),
                  pl.BlockSpec((f_in, h), lambda i: (0, 0)),
                  pl.BlockSpec((1, h), lambda i: (0, 0))],
        out_specs=pl.BlockSpec((tm, h), lambda i: (i, 0)),
        out_shape=jax.ShapeDtypeStruct((n_pad, h), out_dtype),
        compiler_params=_compiler_params(("parallel",)),
    )(x, w, b)


def proj_in_call(feats, w, b, tm):
    return _row_tiled_linear_call(linear_gelu_kernel, feats, w, b, tm, jnp.float32)


def project_relu_call(x, w, b, tm):
    return _row_tiled_linear_call(project_relu_kernel, x, w, b, tm, jnp.bfloat16)


def sage_aggregate_call(a_bf16, h_bf16, x, wl, bl, wr, ln_g, ln_b, *, tm, tk, activate):
    n_pad, hdim = x.shape
    kt = n_pad // tk
    a_spec = pl.BlockSpec((tm, tk), lambda i, k: (i, k))
    if kt > 2:
        # A tiles are read-once streaming traffic: deepen the pipeline to hide HBM latency.
        a_spec = pl.BlockSpec((tm, tk), lambda i, k: (i, k), pipeline_mode=pl.Buffered(3))
    return pl.pallas_call(
        functools.partial(sage_agg_kernel, activate=activate),
        grid=(n_pad // tm, kt),
        in_specs=[a_spec,
                  pl.BlockSpec((tk, hdim), lambda i, k: (k, 0)),
                  pl.BlockSpec((tm, hdim), lambda i, k: (i, 0)),
                  pl.BlockSpec((hdim, hdim), lambda i, k: (0, 0)),
                  pl.BlockSpec((1, hdim), lambda i, k: (0, 0)),
                  pl.BlockSpec((hdim, hdim), lambda i, k: (0, 0)),
                  pl.BlockSpec((1, hdim), lambda i, k: (0, 0)),
                  pl.BlockSpec((1, hdim), lambda i, k: (0, 0))],
        out_specs=pl.BlockSpec((tm, hdim), lambda i, k: (i, 0)),
        out_shape=jax.ShapeDtypeStruct((n_pad, hdim), jnp.float32),
        scratch_shapes=[pltpu.VMEM((tm, hdim), jnp.float32)],
        compiler_params=_compiler_params(("parallel", "arbitrary")),
    )(a_bf16, h_bf16, x, wl, bl, wr, ln_g, ln_b)


# ----------------------------------------------------------------------------- params
def init_params(key, cfgs, hidden_size, num_sageconv_layers):
    keys = iter(jax.random.split(key, 64))
    params = {"emb": {}}
    for name in ("vrtx", "acos", "norm", "area"):
        nb, dim = cfgs[name]["num_bins"], cfgs[name]["embedding_dim"]
        params["emb"][name] = jax.random.normal(next(keys), (nb, dim), jnp.float32)

    input_size = sum(cfgs[n]["embedding_dim"] * NUM_EXTRACTED_FEATURES[n] for n in cfgs)

    def linear(k, fan_in, fan_out, bias=True):
        bound = 1.0 / math.sqrt(fan_in)
        k1, k2 = jax.random.split(k)
        w = jax.random.uniform(k1, (fan_in, fan_out), jnp.float32, -bound, bound)
        b = (jax.random.uniform(k2, (1, fan_out), jnp.float32, -bound, bound)
             if bias else None)
        return w, b

    params["input_size"] = input_size
    params["proj_w"], params["proj_b"] = linear(next(keys), input_size, hidden_size)
    params["sage"] = []
    for _ in range(num_sageconv_layers):
        wp, bp = linear(next(keys), hidden_size, hidden_size)             # project lin
        wl, bl = linear(next(keys), hidden_size, hidden_size)             # lin_l (bias)
        wr, _ = linear(next(keys), hidden_size, hidden_size, bias=False)  # lin_r (no bias)
        params["sage"].append({"wp": wp, "bp": bp, "wl": wl, "bl": bl, "wr": wr})
    params["ln_g"] = jnp.ones((1, hidden_size), jnp.float32)
    params["ln_b"] = jnp.zeros((1, hidden_size), jnp.float32)
    return params


# ----------------------------------------------------------------------------- forward
def mesh_ae_embedding_forward(params, coords, face_masks, edges, edge_masks, cfgs):
    B, T = face_masks.shape
    H = params["ln_g"].shape[-1]
    N = B * T
    N_pad = _round_up(N, 128)                 # rows padded for (8,128)-aligned tiling
    TM = _pick_tile(N_pad, (256, 128))        # row tile
    TK = _pick_tile(N_pad, (512, 256, 128))   # aggregation reduction tile

    # ---- lane-dense feature extraction + quantization (Pallas) ----
    coords_flat = coords.reshape(N, 9).astype(jnp.float32)
    coords_t = jnp.pad(coords_flat, ((0, N_pad - N), (0, 0))).T          # (9, N_pad)
    qint, cosv = extract_features_call(coords_t, cfgs, N_pad)

    # acos in glue (arccos transcendental); clamp matches the reference exactly.
    acos = jnp.arccos(jnp.clip(cosv, 1e-5 - 1.0, 1.0 - 1e-5))
    lo, hi = cfgs["acos"]["high_low"]
    q_acos = _quantize_jnp(acos, lo, hi, cfgs["acos"]["num_bins"])       # (3, N_pad)
    q_norm, q_area, q_vrtx = qint[0:3], qint[3:4], qint[4:13]

    # ---- embedding lookups; concat order matches extract_features dict:
    #      norm, area, vrtx, acos (each flattened over its feature count) ----
    def emb(name, idx_t):
        tab = params["emb"][name]
        return jnp.take(tab, idx_t.T, axis=0).reshape(N_pad, -1)

    feats = jnp.concatenate(
        [emb("norm", q_norm), emb("area", q_area), emb("vrtx", q_vrtx), emb("acos", q_acos)],
        axis=-1,
    )  # (N_pad, input_size)

    # ---- proj_in: Linear + exact GELU fused (Pallas) ----
    x = proj_in_call(feats, params["proj_w"], params["proj_b"], TM)      # (N_pad, H) f32

    if len(params["sage"]) == 0:
        return x[:N].reshape(B, T, H)

    # ---- compact valid faces (embeds[face_masks]) and build global edge index ----
    mask_flat = face_masks.reshape(-1)
    mask_pad = jnp.pad(mask_flat, (0, N_pad - N))
    counts = jnp.sum(face_masks.astype(jnp.int32), axis=-1)                       # (B,)
    offsets = jnp.concatenate([jnp.zeros((1,), jnp.int32), jnp.cumsum(counts)[:-1]])
    compact_idx = jnp.cumsum(mask_pad.astype(jnp.int32)) - 1                      # flat -> rank
    perm = jnp.argsort(jnp.logical_not(mask_pad).astype(jnp.int32), stable=True)  # compact -> flat
    x_c = x[perm]   # first sum(counts) rows are the compacted valid faces

    edges_g = edges.astype(jnp.int32) + offsets[:, None, None]                    # (B, E, 2)
    emask = edge_masks.reshape(-1)
    src = jnp.where(emask, edges_g[..., 0].reshape(-1), 0)                        # message source
    tgt = jnp.where(emask, edges_g[..., 1].reshape(-1), 0)                        # aggregation target
    w = emask.astype(jnp.float32)
    # TODO(synk): for large meshes replace the dense O(N^2) adjacency with gather-based
    # mean aggregation (scalar-prefetched neighbor offset tables / block-sparse A).
    A = jnp.zeros((N_pad, N_pad), jnp.float32).at[tgt, src].add(w)
    A = (A / jnp.maximum(jnp.sum(A, axis=-1, keepdims=True), 1.0)).astype(jnp.bfloat16)

    ln_g, ln_b = params["ln_g"], params["ln_b"]

    def sage(h_in, layer, activate):
        hp = project_relu_call(h_in, layer["wp"], layer["bp"], TM)   # bf16 messages
        return sage_aggregate_call(A, hp, h_in, layer["wl"], layer["bl"], layer["wr"],
                                   ln_g, ln_b, tm=TM, tk=TK, activate=activate)

    # sageconv_in + fused sageconv_activate (GELU + LayerNorm)
    x_c = sage(x_c, params["sage"][0], activate=True)
    for layer in params["sage"][1:]:
        x_c = sage(x_c, layer, activate=False)

    # ---- masked_scatter back to (B, T, H); padded (unmasked) rows set to 0
    # (torch's new_empty leaves them uninitialized) ----
    gathered = x_c[jnp.clip(compact_idx, 0, N_pad - 1)]
    out = jnp.where(mask_pad[:, None], gathered, 0.0)[:N].reshape(B, T, H)
    return out


# ----------------------------------------------------------------------------- main
if __name__ == "__main__":
    key = jax.random.PRNGKey(0)
    kc, kp, ke = jax.random.split(key, 3)

    B, T, E, H = 2, 8, 12, 32
    NUM_SAGECONV_LAYERS = 2

    coords = jax.random.uniform(kc, (B, T, 3, 3), jnp.float32, -1.0, 1.0)
    counts = jnp.array([8, 6], jnp.int32)
    face_masks = jnp.arange(T)[None, :] < counts[:, None]           # (B, T) bool
    # edges reference per-batch compacted valid-face indices (< counts[b])
    edges = jax.random.randint(ke, (B, E, 2), 0, 6)
    edge_masks = jnp.arange(E)[None, :] < jnp.array([10, 8])[:, None]

    params = init_params(kp, FEATURE_CONFIGS, H, NUM_SAGECONV_LAYERS)
    out = mesh_ae_embedding_forward(
        params, coords, face_masks, edges, edge_masks, FEATURE_CONFIGS
    )
    out = jax.block_until_ready(out)
    assert out.shape == (B, T, H) and out.dtype == jnp.float32
    assert bool(jnp.all(jnp.isfinite(out)))
    print("KERNEL_OK")
</pallas_src>

<mosaic_0001>
module attributes {stable_mosaic.version = 11 : i64} {
  func.func @feature_kernel(%arg0: i32, %arg1: memref<9x128xf32, #tpu.memory_space<vmem>>, %arg2: memref<13x128xi32, #tpu.memory_space<vmem>>, %arg3: memref<3x128xf32, #tpu.memory_space<vmem>>) attributes {dimension_semantics = [#tpu.dimension_semantics<parallel>], iteration_bounds = array<i64: 1>, scalar_prefetch = 0 : i64, scratch_operands = 0 : i64, tpu.core_type = #tpu.core_type<tc>, window_params = [{transform_indices = @transform_0, window_bounds = array<i64: 9, 128>}, {transform_indices = @transform_1, window_bounds = array<i64: 13, 128>}, {transform_indices = @transform_2, window_bounds = array<i64: 3, 128>}]} {
    %c0 = arith.constant 0 : index
    %c0_0 = arith.constant 0 : index
    %0 = vector.load %arg1[%c0, %c0_0] : memref<9x128xf32, #tpu.memory_space<vmem>>, vector<9x128xf32>
    %1 = vector.extract_strided_slice %0 {offsets = [0, 0], sizes = [1, 128], strides = [1, 1]} : vector<9x128xf32> to vector<1x128xf32>
    %2 = vector.extract_strided_slice %0 {offsets = [1, 0], sizes = [1, 128], strides = [1, 1]} : vector<9x128xf32> to vector<1x128xf32>
    %3 = vector.extract_strided_slice %0 {offsets = [2, 0], sizes = [1, 128], strides = [1, 1]} : vector<9x128xf32> to vector<1x128xf32>
    %4 = vector.extract_strided_slice %0 {offsets = [3, 0], sizes = [1, 128], strides = [1, 1]} : vector<9x128xf32> to vector<1x128xf32>
    %5 = vector.extract_strided_slice %0 {offsets = [4, 0], sizes = [1, 128], strides = [1, 1]} : vector<9x128xf32> to vector<1x128xf32>
    %6 = vector.extract_strided_slice %0 {offsets = [5, 0], sizes = [1, 128], strides = [1, 1]} : vector<9x128xf32> to vector<1x128xf32>
    %7 = vector.extract_strided_slice %0 {offsets = [6, 0], sizes = [1, 128], strides = [1, 1]} : vector<9x128xf32> to vector<1x128xf32>
    %8 = vector.extract_strided_slice %0 {offsets = [7, 0], sizes = [1, 128], strides = [1, 1]} : vector<9x128xf32> to vector<1x128xf32>
    %9 = vector.extract_strided_slice %0 {offsets = [8, 0], sizes = [1, 128], strides = [1, 1]} : vector<9x128xf32> to vector<1x128xf32>
    %10 = arith.subf %1, %7 : vector<1x128xf32>
    %11 = arith.subf %2, %8 : vector<1x128xf32>
    %12 = arith.subf %3, %9 : vector<1x128xf32>
    %13 = arith.subf %4, %1 : vector<1x128xf32>
    %14 = arith.subf %5, %2 : vector<1x128xf32>
    %15 = arith.subf %6, %3 : vector<1x128xf32>
    %16 = arith.mulf %11, %15 : vector<1x128xf32>
    %17 = arith.mulf %12, %14 : vector<1x128xf32>
    %18 = arith.subf %16, %17 : vector<1x128xf32>
    %19 = arith.mulf %12, %13 : vector<1x128xf32>
    %20 = arith.mulf %10, %15 : vector<1x128xf32>
    %21 = arith.subf %19, %20 : vector<1x128xf32>
    %22 = arith.mulf %10, %14 : vector<1x128xf32>
    %23 = arith.mulf %11, %13 : vector<1x128xf32>
    %24 = arith.subf %22, %23 : vector<1x128xf32>
    %25 = arith.mulf %18, %18 : vector<1x128xf32>
    %26 = arith.mulf %21, %21 : vector<1x128xf32>
    %27 = arith.addf %25, %26 : vector<1x128xf32>
    %28 = arith.mulf %24, %24 : vector<1x128xf32>
    %29 = arith.addf %27, %28 : vector<1x128xf32>
    %30 = math.sqrt %29 : vector<1x128xf32>
    %cst = arith.constant 9.99999996E-13 : f32
    %31 = vector.broadcast %cst : f32 to vector<1x128xf32>
    %32 = arith.maximumf %30, %31 : vector<1x128xf32>
    %cst_1 = arith.constant 1.000000e+00 : f32
    %33 = vector.broadcast %cst_1 : f32 to vector<1x128xf32>
    %34 = arith.divf %33, %32 : vector<1x128xf32>
    %cst_2 = arith.constant 5.000000e-01 : f32
    %35 = vector.broadcast %cst_2 : f32 to vector<1x128xf32>
    %36 = arith.mulf %30, %35 : vector<1x128xf32>
    %37 = arith.mulf %1, %1 : vector<1x128xf32>
    %38 = arith.mulf %2, %2 : vector<1x128xf32>
    %39 = arith.addf %37, %38 : vector<1x128xf32>
    %40 = arith.mulf %3, %3 : vector<1x128xf32>
    %41 = arith.addf %39, %40 : vector<1x128xf32>
    %42 = arith.mulf %4, %4 : vector<1x128xf32>
    %43 = arith.mulf %5, %5 : vector<1x128xf32>
    %44 = arith.addf %42, %43 : vector<1x128xf32>
    %45 = arith.mulf %6, %6 : vector<1x128xf32>
    %46 = arith.addf %44, %45 : vector<1x128xf32>
    %47 = arith.mulf %7, %7 : vector<1x128xf32>
    %48 = arith.mulf %8, %8 : vector<1x128xf32>
    %49 = arith.addf %47, %48 : vector<1x128xf32>
    %50 = arith.mulf %9, %9 : vector<1x128xf32>
    %51 = arith.addf %49, %50 : vector<1x128xf32>
    %52 = arith.mulf %1, %7 : vector<1x128xf32>
    %53 = arith.mulf %2, %8 : vector<1x128xf32>
    %54 = arith.addf %52, %53 : vector<1x128xf32>
    %55 = arith.mulf %3, %9 : vector<1x128xf32>
    %56 = arith.addf %54, %55 : vector<1x128xf32>
    %57 = arith.mulf %41, %51 : vector<1x128xf32>
    %58 = math.sqrt %57 : vector<1x128xf32>
    %cst_3 = arith.constant 9.99999993E-9 : f32
    %59 = vector.broadcast %cst_3 : f32 to vector<1x128xf32>
    %60 = arith.maximumf %58, %59 : vector<1x128xf32>
    %61 = arith.divf %56, %60 : vector<1x128xf32>
    %62 = arith.mulf %4, %1 : vector<1x128xf32>
    %63 = arith.mulf %5, %2 : vector<1x128xf32>
    %64 = arith.addf %62, %63 : vector<1x128xf32>
    %65 = arith.mulf %6, %3 : vector<1x128xf32>
    %66 = arith.addf %64, %65 : vector<1x128xf32>
    %67 = arith.mulf %46, %41 : vector<1x128xf32>
    %68 = math.sqrt %67 : vector<1x128xf32>
    %cst_4 = arith.constant 9.99999993E-9 : f32
    %69 = vector.broadcast %cst_4 : f32 to vector<1x128xf32>
    %70 = arith.maximumf %68, %69 : vector<1x128xf32>
    %71 = arith.divf %66, %70 : vector<1x128xf32>
    %72 = arith.mulf %7, %4 : vector<1x128xf32>
    %73 = arith.mulf %8, %5 : vector<1x128xf32>
    %74 = arith.addf %72, %73 : vector<1x128xf32>
    %75 = arith.mulf %9, %6 : vector<1x128xf32>
    %76 = arith.addf %74, %75 : vector<1x128xf32>
    %77 = arith.mulf %51, %46 : vector<1x128xf32>
    %78 = math.sqrt %77 : vector<1x128xf32>
    %cst_5 = arith.constant 9.99999993E-9 : f32
    %79 = vector.broadcast %cst_5 : f32 to vector<1x128xf32>
    %80 = arith.maximumf %78, %79 : vector<1x128xf32>
    %81 = arith.divf %76, %80 : vector<1x128xf32>
    %c0_6 = arith.constant 0 : index
    %c0_7 = arith.constant 0 : index
    %82 = vector.load %arg3[%c0_6, %c0_7] : memref<3x128xf32, #tpu.memory_space<vmem>>, vector<1x128xf32>
    tpu.vector_store %arg3[%c0_6, %c0_7], %61 {strides = array<i32>} : memref<3x128xf32, #tpu.memory_space<vmem>>, vector<1x128xf32>,
    %c1 = arith.constant 1 : index
    %c0_8 = arith.constant 0 : index
    %83 = vector.load %arg3[%c1, %c0_8] : memref<3x128xf32, #tpu.memory_space<vmem>>, vector<1x128xf32>
    tpu.vector_store %arg3[%c1, %c0_8], %71 {strides = array<i32>} : memref<3x128xf32, #tpu.memory_space<vmem>>, vector<1x128xf32>,
    %c2 = arith.constant 2 : index
    %c0_9 = arith.constant 0 : index
    %84 = vector.load %arg3[%c2, %c0_9] : memref<3x128xf32, #tpu.memory_space<vmem>>, vector<1x128xf32>
    tpu.vector_store %arg3[%c2, %c0_9], %81 {strides = array<i32>} : memref<3x128xf32, #tpu.memory_space<vmem>>, vector<1x128xf32>,
    %85 = arith.mulf %18, %34 : vector<1x128xf32>
    %cst_10 = arith.constant -1.000000e+00 : f32
    %86 = vector.broadcast %cst_10 : f32 to vector<1x128xf32>
    %87 = arith.subf %85, %86 : vector<1x128xf32>
    %cst_11 = arith.constant 2.000000e+00 : f32
    %88 = vector.broadcast %cst_11 : f32 to vector<1x128xf32>
    %89 = arith.divf %87, %88 : vector<1x128xf32>
    %cst_12 = arith.constant 6.400000e+01 : f32
    %90 = vector.broadcast %cst_12 : f32 to vector<1x128xf32>
    %91 = arith.mulf %89, %90 : vector<1x128xf32>
    %92 = math.floor %91 : vector<1x128xf32>
    %c0_i32 = arith.constant 0 : i32
    %c63_i32 = arith.constant 63 : i32
    %93 = arith.sitofp %c0_i32 : i32 to f32
    %94 = vector.broadcast %93 : f32 to vector<1x128xf32>
    %95 = arith.maximumf %94, %92 : vector<1x128xf32>
    %96 = arith.sitofp %c63_i32 : i32 to f32
    %97 = vector.broadcast %96 : f32 to vector<1x128xf32>
    %98 = arith.minimumf %97, %95 : vector<1x128xf32>
    %99 = arith.fptosi %98 : vector<1x128xf32> to vector<1x128xi32>
    %c0_13 = arith.constant 0 : index
    %c0_14 = arith.constant 0 : index
    %100 = vector.load %arg2[%c0_13, %c0_14] : memref<13x128xi32, #tpu.memory_space<vmem>>, vector<1x128xi32>
    tpu.vector_store %arg2[%c0_13, %c0_14], %99 {strides = array<i32>} : memref<13x128xi32, #tpu.memory_space<vmem>>, vector<1x128xi32>,
    %101 = arith.mulf %21, %34 : vector<1x128xf32>
    %cst_15 = arith.constant -1.000000e+00 : f32
    %102 = vector.broadcast %cst_15 : f32 to vector<1x128xf32>
    %103 = arith.subf %101, %102 : vector<1x128xf32>
    %cst_16 = arith.constant 2.000000e+00 : f32
    %104 = vector.broadcast %cst_16 : f32 to vector<1x128xf32>
    %105 = arith.divf %103, %104 : vector<1x128xf32>
    %cst_17 = arith.constant 6.400000e+01 : f32
    %106 = vector.broadcast %cst_17 : f32 to vector<1x128xf32>
    %107 = arith.mulf %105, %106 : vector<1x128xf32>
    %108 = math.floor %107 : vector<1x128xf32>
    %c0_i32_18 = arith.constant 0 : i32
    %c63_i32_19 = arith.constant 63 : i32
    %109 = arith.sitofp %c0_i32_18 : i32 to f32
    %110 = vector.broadcast %109 : f32 to vector<1x128xf32>
    %111 = arith.maximumf %110, %108 : vector<1x128xf32>
    %112 = arith.sitofp %c63_i32_19 : i32 to f32
    %113 = vector.broadcast %112 : f32 to vector<1x128xf32>
    %114 = arith.minimumf %113, %111 : vector<1x128xf32>
    %115 = arith.fptosi %114 : vector<1x128xf32> to vector<1x128xi32>
    %c1_20 = arith.constant 1 : index
    %c0_21 = arith.constant 0 : index
    %116 = vector.load %arg2[%c1_20, %c0_21] : memref<13x128xi32, #tpu.memory_space<vmem>>, vector<1x128xi32>
    tpu.vector_store %arg2[%c1_20, %c0_21], %115 {strides = array<i32>} : memref<13x128xi32, #tpu.memory_space<vmem>>, vector<1x128xi32>,
    %117 = arith.mulf %24, %34 : vector<1x128xf32>
    %cst_22 = arith.constant -1.000000e+00 : f32
    %118 = vector.broadcast %cst_22 : f32 to vector<1x128xf32>
    %119 = arith.subf %117, %118 : vector<1x128xf32>
    %cst_23 = arith.constant 2.000000e+00 : f32
    %120 = vector.broadcast %cst_23 : f32 to vector<1x128xf32>
    %121 = arith.divf %119, %120 : vector<1x128xf32>
    %cst_24 = arith.constant 6.400000e+01 : f32
    %122 = vector.broadcast %cst_24 : f32 to vector<1x128xf32>
    %123 = arith.mulf %121, %122 : vector<1x128xf32>
    %124 = math.floor %123 : vector<1x128xf32>
    %c0_i32_25 = arith.constant 0 : i32
    %c63_i32_26 = arith.constant 63 : i32
    %125 = arith.sitofp %c0_i32_25 : i32 to f32
    %126 = vector.broadcast %125 : f32 to vector<1x128xf32>
    %127 = arith.maximumf %126, %124 : vector<1x128xf32>
    %128 = arith.sitofp %c63_i32_26 : i32 to f32
    %129 = vector.broadcast %128 : f32 to vector<1x128xf32>
    %130 = arith.minimumf %129, %127 : vector<1x128xf32>
    %131 = arith.fptosi %130 : vector<1x128xf32> to vector<1x128xi32>
    %c2_27 = arith.constant 2 : index
    %c0_28 = arith.constant 0 : index
    %132 = vector.load %arg2[%c2_27, %c0_28] : memref<13x128xi32, #tpu.memory_space<vmem>>, vector<1x128xi32>
    tpu.vector_store %arg2[%c2_27, %c0_28], %131 {strides = array<i32>} : memref<13x128xi32, #tpu.memory_space<vmem>>, vector<1x128xi32>,
    %cst_29 = arith.constant 0.000000e+00 : f32
    %133 = vector.broadcast %cst_29 : f32 to vector<1x128xf32>
    %134 = arith.subf %36, %133 : vector<1x128xf32>
    %cst_30 = arith.constant 2.000000e+00 : f32
    %135 = vector.broadcast %cst_30 : f32 to vector<1x128xf32>
    %136 = arith.divf %134, %135 : vector<1x128xf32>
    %cst_31 = arith.constant 6.400000e+01 : f32
    %137 = vector.broadcast %cst_31 : f32 to vector<1x128xf32>
    %138 = arith.mulf %136, %137 : vector<1x128xf32>
    %139 = math.floor %138 : vector<1x128xf32>
    %c0_i32_32 = arith.constant 0 : i32
    %c63_i32_33 = arith.constant 63 : i32
    %140 = arith.sitofp %c0_i32_32 : i32 to f32
    %141 = vector.broadcast %140 : f32 to vector<1x128xf32>
    %142 = arith.maximumf %141, %139 : vector<1x128xf32>
    %143 = arith.sitofp %c63_i32_33 : i32 to f32
    %144 = vector.broadcast %143 : f32 to vector<1x128xf32>
    %145 = arith.minimumf %144, %142 : vector<1x128xf32>
    %146 = arith.fptosi %145 : vector<1x128xf32> to vector<1x128xi32>
    %c3 = arith.constant 3 : index
    %c0_34 = arith.constant 0 : index
    %147 = vector.load %arg2[%c3, %c0_34] : memref<13x128xi32, #tpu.memory_space<vmem>>, vector<1x128xi32>
    tpu.vector_store %arg2[%c3, %c0_34], %146 {strides = array<i32>} : memref<13x128xi32, #tpu.memory_space<vmem>>, vector<1x128xi32>,
    %cst_35 = arith.constant -1.000000e+00 : f32
    %148 = vector.broadcast %cst_35 : f32 to vector<9x128xf32>
    %149 = arith.subf %0, %148 : vector<9x128xf32>
    %cst_36 = arith.constant 2.000000e+00 : f32
    %150 = vector.broadcast %cst_36 : f32 to vector<9x128xf32>
    %151 = arith.divf %149, %150 : vector<9x128xf32>
    %cst_37 = arith.constant 1.280000e+02 : f32
    %152 = vector.broadcast %cst_37 : f32 to vector<9x128xf32>
    %153 = arith.mulf %151, %152 : vector<9x128xf32>
    %154 = math.floor %153 : vector<9x128xf32>
    %c0_i32_38 = arith.constant 0 : i32
    %c127_i32 = arith.constant 127 : i32
    %155 = arith.sitofp %c0_i32_38 : i32 to f32
    %156 = vector.broadcast %155 : f32 to vector<9x128xf32>
    %157 = arith.maximumf %156, %154 : vector<9x128xf32>
    %158 = arith.sitofp %c127_i32 : i32 to f32
    %159 = vector.broadcast %158 : f32 to vector<9x128xf32>
    %160 = arith.minimumf %159, %157 : vector<9x128xf32>
    %161 = arith.fptosi %160 : vector<9x128xf32> to vector<9x128xi32>
    %c4 = arith.constant 4 : index
    %c0_39 = arith.constant 0 : index
    %162 = vector.load %arg2[%c4, %c0_39] : memref<13x128xi32, #tpu.memory_space<vmem>>, vector<9x128xi32>
    tpu.vector_store %arg2[%c4, %c0_39], %161 {strides = array<i32>} : memref<13x128xi32, #tpu.memory_space<vmem>>, vector<9x128xi32>,
    return
  }
  func.func @transform_0(%arg0: i32) -> (i32, i32) {
    %c0_i32 = arith.constant 0 : i32
    %c0_i32_0 = arith.constant 0 : i32
    return %c0_i32, %arg0 : i32, i32
  }
  func.func @transform_1(%arg0: i32) -> (i32, i32) {
    %c0_i32 = arith.constant 0 : i32
    %c0_i32_0 = arith.constant 0 : i32
    return %c0_i32, %arg0 : i32, i32
  }
  func.func @transform_2(%arg0: i32) -> (i32, i32) {
    %c0_i32 = arith.constant 0 : i32
    %c0_i32_0 = arith.constant 0 : i32
    return %c0_i32, %arg0 : i32, i32
  }
}

</mosaic_0001>

<bundles_post_ra>
// kernel: tpu_custom_call.1
= control target key start
LH: loop header
LB: loop body
LE: loop exit
PB: predicated region body
PF: predicated region fallthrough
CT: control target
= control target key end

     0   :  { %8 = vsyncpa [#allocation3], 0  ;;  %s654_s0 = inlined_call_operand.hbm [shape: f32[9,128], index: 0, kind: input, shape index: {}]   ;;  %s655_s1 = inlined_call_operand.hbm [shape: s32[13,128], index: 1, kind: output, shape index: {0}]   ;;  %s656_s2 = inlined_call_operand.hbm [shape: f32[3,128], index: 2, kind: output, shape index: {1}]  }
   0x1   :  { %9 = vsyncpa [#allocation4], 0 }
   0x2   :  { %10 = vsyncpa [#allocation7], 0  ;;  %s15_s11 = sshll.u32 %s654_s0, 4  ;;  %s455_s12 = smov [#allocation2]   ;;  %s16_s11 = int_to_ptr.hbm [resolvable:$true] %s15_s11 }
   0x3   :  { %s17_s13 = sshll.u32 %s455_s12, 4  ;;  %s456_s14 = smov 128   ;;  %s18_s13 = int_to_ptr.vmem [resolvable:$true] %s17_s13 }
   0x4   :  { %s457_s15 = smov 8  }
   0x5   :  { %23 = dma.hbm_to_vmem [thread:$0]  %s16_s11, 256, %s18_s13, [#allocation3], %s456_s14, %s456_s14, %s457_s15  }
   0x6   :  { %449 = dma.done.wait [#allocation3], 256  }
   0x7   :  { %450 = vsyncadd [#allocation3], 4294967040  ;;  %v482_v0 = vld [vmem:[#allocation2] sm:$0xff]  ;;  %v484_v1 = vld [vmem:[#allocation2 + $0x8] sm:$0x1]  ;;  %s459_s0 = smov [#allocation6]  }
   0x8   :  { %v31_v2 = vrot.slane %v482_v0, 6  ;;  %v35_v3 = vrot.slane %v484_v1, 6  ;;  %v489_v4 = vrot.slane %v482_v0, 5  ;;  %v107_v5 = vmul.f32 %v482_v0, %v482_v0  ;;  %s319_s16 = sshll.u32 %s459_s0, 4  ;;  %s321_s19 = sshll.u32 %s656_s2, 4  ;;  %s320_s16 = int_to_ptr.vmem [resolvable:$true] %s319_s16  ;;  %s322_s19 = int_to_ptr.hbm [resolvable:$true] %s321_s19 }
   0x9   :  { %v115_v6 = vmul.f32 %v484_v1, %v484_v1  ;;  %s460_s2 = smov [#allocation5]   ;;  %s307_s23 = sshll.u32 %s655_s1, 4  ;;  %s308_s23 = int_to_ptr.hbm [resolvable:$true] %s307_s23 }
   0xa   :  { %v33_v7 = vsub.f32 %v482_v0, %v31_v2  ;;  %v37_v8 = vsub.f32 %v482_v0, %v35_v3  ;;  %v40_v9 = vsub.f32 %v482_v0, %v489_v4  ;;  %v109_v10 = vrot.slane %v107_v5, 1  ;;  %s305_s20 = sshll.u32 %s460_s2, 4  ;;  %s306_s20 = int_to_ptr.vmem [resolvable:$true] %s305_s20 }
   0xb   :  { %v112_v11 = vrot.slane %v107_v5, 2  ;;  %v117_v12 = vrot.slane %v115_v6, 2  ;;  %v120_v41 = vmul.f32 %v31_v2, %v482_v0  ;;  %v125_v48 = vmul.f32 %v35_v3, %v482_v0 }
   0xc   :  { %v52_v13 = vrot.slane %v40_v9, 1  ;;  %v55_v14 = vrot.slane %v40_v9, 5  ;;  %v111_v15 = vadd.f32 %v109_v10, %v107_v5  ;;  %v42_v16 = vrot.slane %v40_v9, 4 }
   0xd   :  { %v45_v17 = vrot.slane %v40_v9, 2  ;;  %v122_v50 = vrot.slane %v120_v41, 1  ;;  %v127_v56 = vrot.slane %v125_v48, 2  ;;  %v162_v60 = vmul.f32 %v489_v4, %v482_v0 }
   0xe   :  { %v54_v18 = vmul.f32 %v52_v13, %v37_v8  ;;  %v57_v19 = vmul.f32 %v55_v14, %v33_v7  ;;  %v114_v20 = vadd.f32 %v112_v11, %v111_v15  ;;  %v119_v21 = vadd.f32 %v117_v12, %v111_v15 }
   0xf   :  { %v44_v22 = vmul.f32 %v42_v16, %v33_v7  ;;  %v47_v23 = vmul.f32 %v45_v17, %v37_v8  ;;  %v62_v24 = vmul.f32 %v45_v17, %v33_v7  ;;  %v124_v58 = vadd.f32 %v122_v50, %v120_v41 }
  0x10   :  { %v59_v25 = vrot.slane %v57_v19, 6  ;;  %v131_v26 = vrot.slane %v119_v21, 6  ;;  %v171_v27 = vrot.slane %v114_v20, 5  ;;  %v458_v6 = vmov 2.0  }
  0x11   :  { %v49_v28 = vrot.slane %v47_v23, 1  ;;  %v64_v29 = vrot.slane %v62_v24, 1  ;;  %v202_v8 = vmul.f32 %v489_v4, %v484_v1  ;;  %v164_v11 = vrot.slane %v162_v60, 1 }
  0x12   :  { %v499_v30 = vsub.f32 %v54_v18, %v59_v25  ;;  %v501_v31 = vmul.f32 %v131_v26, %v114_v20  ;;  %v503_v32 = vmul.f32 %v171_v27, %v114_v20  ;;  %v505_v33 = vmul.f32 %v171_v27, %v119_v21 }
  0x13   :  { %v507_v34 = vsub.f32 %v44_v22, %v49_v28  ;;  %v509_v35 = vsub.f32 %v44_v22, %v64_v29  ;;  %v167_v4 = vrot.slane %v162_v60, 2  ;;  %v204_v21 = vrot.slane %v202_v8, 2 }
  0x14   :  { %359 = vrsqrt.f32 %v501_v31  ;;  %v68_v37 = vmul.f32 %v499_v30, %v499_v30  ;;  %vm141_vm0 = vcmp.eq.f32.partialorder %v501_v31, inf  ;;  %vm143_vm1 = vcmp.eq.f32.partialorder %v501_v31, 0.0 }
  0x15   :  { %361 = vrsqrt.f32 %v503_v32  ;;  %v67_v36 = vmul.f32 %v507_v34, %v507_v34  ;;  %v73_v38 = vmul.f32 %v509_v35, %v509_v35  ;;  %v144_v62 = vand.u32 2147483648, %v501_v31 }
  0x16   :  { %363 = vrsqrt.f32 %v505_v33  ;;  %v70_v39 = vrot.slane %v68_v37, 1  ;;  %vm181_vm2 = vcmp.eq.f32.partialorder %v503_v32, inf  ;;  %vm183_vm3 = vcmp.eq.f32.partialorder %v503_v32, 0.0 }
  0x17   :  { %v75_v40 = vrot.slane %v73_v38, 7  ;;  %v184_v12 = vand.u32 2147483648, %v503_v32  ;;  %vm215_vm4 = vcmp.eq.f32.partialorder %v505_v33, inf  ;;  %v218_v15 = vand.u32 2147483648, %v505_v33 }
  0x18   :  { %v72_v42 = vadd.f32 %v70_v39, %v67_v36  ;;  %vm217_vm5 = vcmp.eq.f32.partialorder %v505_v33, 0.0  ;;  %v166_v25 = vadd.f32 %v164_v11, %v162_v60 }
  0x1a   :  { %v360_v43 = vpop.eup %359  ;;  %v522_v46 = vadd.f32 %v75_v40, %v72_v42 }
  0x1b   :  { %v362_v44 = vpop.eup %361  ;;  %v135_v45 = vmul.f32 %v360_v43, %v501_v31 }
  0x1c   :  { %v364_v47 = vpop.eup %363  ;;  %v175_v49 = vmul.f32 %v362_v44, %v503_v32  ;;  %365 = vrsqrt.f32 %v522_v46  ;;  %vm85_vm6 = vcmp.eq.f32.partialorder %v522_v46, inf  ;;  %vm87_vm7 = vcmp.eq.f32.partialorder %v522_v46, 0.0 }
  0x1d   :  { %v136_v51 = vmul.f32 %v360_v43, %v135_v45  ;;  %v209_v52 = vmul.f32 %v364_v47, %v505_v33  ;;  %367 = vrcp.f32 %v458_v6  ;;  %v88_v42 = vand.u32 2147483648, %v522_v46 }
  0x1e   :  { %v176_v53 = vmul.f32 %v362_v44, %v175_v49 }
  0x1f   :  { %v137_v54 = vmul.f32 0.5, %v136_v51  ;;  %v210_v55 = vmul.f32 %v364_v47, %v209_v52  ;;  %v339_v52 = vadd.f32 1.0, %v482_v0 }
  0x20   :  { %v177_v57 = vmul.f32 0.5, %v176_v53  ;;  %v340_v53 = vadd.f32 1.0, %v484_v1 }
  0x21   :  { %v138_v59 = vsub.f32 1.5, %v137_v54  ;;  %v211_v61 = vmul.f32 0.5, %v210_v55 }
  0x22   :  { %v178_v63 = vsub.f32 1.5, %v177_v57  ;;  %v366_v2 = vpop.eup %365 }
  0x23   :  { %v139_v3 = vmul.f32 %v360_v43, %v138_v59  ;;  %v212_v5 = vsub.f32 1.5, %v211_v61  ;;  %v79_v9 = vmul.f32 %v366_v2, %v522_v46  ;;  %v368_v23 = vpop.eup %367 }
  0x24   :  { %v179_v7 = vmul.f32 %v362_v44, %v178_v63  ;;  %v242_v37 = vmul.f32 2.0, %v368_v23  ;;  %vm246_vm11 = vweird.f32 %v368_v23 }
  0x25   :  { %v140_v10 = vmul.f32 %v139_v3, %v501_v31  ;;  %v213_v13 = vmul.f32 %v364_v47, %v212_v5  ;;  %v80_v16 = vmul.f32 %v366_v2, %v79_v9 }
  0x26   :  { %v180_v14 = vmul.f32 %v179_v7, %v503_v32  ;;  %v243_v43 = vsub.f32 1.0, %v242_v37 }
  0x27   :  { %v142_v17 = vsel %vm141_vm0, %v501_v31, %v140_v10  ;;  %v214_v18 = vmul.f32 %v213_v13, %v505_v33  ;;  %v81_v22 = vmul.f32 0.5, %v80_v16  ;;  %v556_v31 = vadd.f32 %v127_v56, %v124_v58 }
  0x28   :  { %v145_v19 = vsel %vm143_vm1, %v144_v62, %v142_v17  ;;  %v182_v20 = vsel %vm181_vm2, %v503_v32, %v180_v14  ;;  %v562_v32 = vadd.f32 %v167_v4, %v166_v25  ;;  %v244_v49 = vmul.f32 %v368_v23, %v243_v43 }
  0x29   :  { %v146_v24 = vmax.f32 %v145_v19, 1e-08  ;;  %v185_v26 = vsel %vm183_vm3, %v184_v12, %v182_v20  ;;  %v216_v27 = vsel %vm215_vm4, %v505_v33, %v214_v18  ;;  %v82_v36 = vsub.f32 1.5, %v81_v22 }
  0x2a   :  { %v186_v28 = vmax.f32 %v185_v26, 1e-08  ;;  %v219_v29 = vsel %vm217_vm5, %v218_v15, %v216_v27  ;;  %v564_v33 = vadd.f32 %v204_v21, %v166_v25  ;;  %v245_v58 = vadd.f32 %v368_v23, %v244_v49 }
  0x2b   :  { %369 = vrcp.f32 %v146_v24  ;;  %v156_v38 = vand.u32 2147483647, %v146_v24  ;;  %v158_v39 = vand.u32 2147483648, %v146_v24  ;;  %v559_v40 = vmax.f32 %v219_v29, 1e-08 }
  0x2c   :  { %371 = vrcp.f32 %v186_v28  ;;  %v83_v41 = vmul.f32 %v366_v2, %v82_v36  ;;  %vm152_vm8 = vweird.f32 %v146_v24  ;;  %vm192_vm9 = vweird.f32 %v186_v28 }
  0x2d   :  { %v196_v44 = vand.u32 2147483647, %v186_v28  ;;  %373 = vrcp.f32 %v559_v40  ;;  %vm568_vm10 = vcmp.eq.f32.partialorder %v156_v38, 8.507059e+37  ;;  %v198_v47 = vand.u32 2147483648, %v186_v28 }
  0x2e   :  { %v84_v48 = vmul.f32 %v83_v41, %v522_v46  ;;  %v159_v51 = vor.u32 1.1754944e-38, %v158_v39  ;;  %v230_v56 = vand.u32 2147483647, %v559_v40  ;;  %v232_v60 = vand.u32 2147483648, %v559_v40 }
  0x2f   :  { %v584_v1 = vsel %vm246_vm11, %v368_v23, %v245_v58  ;;  %vm588_vm14 = vcmp.eq.f32.partialorder %v196_v44, 8.507059e+37  ;;  %v199_v11 = vor.u32 1.1754944e-38, %v198_v47  ;;  %vm226_vm0 = vweird.f32 %v559_v40 }
  0x30   :  { %v86_v57 = vsel %vm85_vm6, %v522_v46, %v84_v48  ;;  %v287_v5 = vmul.f32 %v339_v52, %v584_v1  ;;  %v288_v6 = vmul.f32 %v340_v53, %v584_v1  ;;  %vm607_vm3 = vcmp.eq.f32.partialorder %v230_v56, 8.507059e+37 }
  0x31   :  { %v370_v50 = vpop.eup %369  ;;  %v89_v61 = vsel %vm87_vm7, %v88_v42, %v86_v57  ;;  %v233_v18 = vor.u32 1.1754944e-38, %v232_v60 }
  0x32   :  { %v372_v54 = vpop.eup %371  ;;  %v148_v55 = vmul.f32 %v370_v50, %v146_v24  ;;  %vm153_vm12 = vweird.f32 %v370_v50  ;;  %v582_v0 = vmax.f32 %v89_v61, 1e-12  ;;  %v106_v63 = vmul.f32 0.5, %v89_v61 }
  0x33   :  { %v188_v59 = vmul.f32 %v372_v54, %v186_v28  ;;  %v374_v2 = vpop.eup %373  ;;  %vm193_vm13 = vweird.f32 %v372_v54  ;;  %vm596_vm15 = vmor %vm152_vm8, %vm153_vm12  ;;  %v289_v16 = vmul.f32 128.0, %v287_v5  ;;  %v290_v19 = vmul.f32 128.0, %v288_v6 }
  0x34   :  { %v149_v62 = vsub.f32 1.0, %v148_v55  ;;  %v222_v46 = vmul.f32 %v374_v2, %v559_v40  ;;  %375 = vrcp.f32 %v582_v0  ;;  %vm227_vm1 = vweird.f32 %v374_v2  ;;  %vm602_vm2 = vmor %vm192_vm9, %vm193_vm13 }
  0x35   :  { %v189_v3 = vsub.f32 1.0, %v188_v59  ;;  %v278_v15 = vmul.f32 %v584_v1, %v106_v63  ;;  %v291_v23 = vfloor.f32 %v289_v16  ;;  %vm620_vm4 = vmor %vm226_vm0, %vm227_vm1  ;;  %vm96_vm5 = vweird.f32 %v582_v0 }
  0x36   :  { %v150_v7 = vmul.f32 %v370_v50, %v149_v62  ;;  %v223_v14 = vsub.f32 1.0, %v222_v46  ;;  %v292_v27 = vfloor.f32 %v290_v19  ;;  %v100_v40 = vand.u32 2147483647, %v582_v0 }
  0x37   :  { %v190_v10 = vmul.f32 %v372_v54, %v189_v3  ;;  %v279_v22 = vmul.f32 64.0, %v278_v15  ;;  %v293_v42 = vmax.f32 %v291_v23, 0.0  ;;  %v102_v43 = vand.u32 2147483648, %v582_v0 }
  0x38   :  { %v151_v12 = vadd.f32 %v370_v50, %v150_v7  ;;  %v224_v21 = vmul.f32 %v374_v2, %v223_v14  ;;  %v294_v45 = vmax.f32 %v292_v27, 0.0  ;;  %vm101_vm8 = vcmp.eq.f32.partialorder %v100_v40, 8.507059e+37 }
  0x39   :  { %v191_v17 = vadd.f32 %v372_v54, %v190_v10  ;;  %v280_v38 = vfloor.f32 %v279_v22  ;;  %v295_v48 = vmin.f32 %v293_v42, 127.0 }
  0x3a   :  { %v155_v20 = vsel %vm596_vm15, %v370_v50, %v151_v12  ;;  %v376_v28 = vpop.eup %375  ;;  %v225_v37 = vadd.f32 %v374_v2, %v224_v21 }
  0x3b   :  { %v160_v24 = vsel %vm568_vm10, %v159_v51, %v155_v20  ;;  %v195_v25 = vsel %vm602_vm2, %v372_v54, %v191_v17  ;;  %v92_v41 = vmul.f32 %v376_v28, %v582_v0  ;;  %v281_v44 = vmax.f32 %v280_v38, 0.0 }
  0x3c   :  { %v161_v29 = vmul.f32 %v160_v24, %v556_v31  ;;  %v200_v36 = vsel %vm588_vm14, %v199_v11, %v195_v25  ;;  %v229_v31 = vsel %vm620_vm4, %v374_v2, %v225_v37  ;;  %vm97_vm6 = vweird.f32 %v376_v28 }
  0x3d   :  { %v201_v39 = vmul.f32 %v200_v36, %v562_v32  ;;  %v234_v32 = vsel %vm607_vm3, %v233_v18, %v229_v31  ;;  %v93_v47 = vsub.f32 1.0, %v92_v41  ;;  %v282_v50 = vmin.f32 %v281_v44, 63.0  ;;  %vm98_vm7 = vmor %vm96_vm5, %vm97_vm6 }
  0x3e   :  { %236 = vst [vmem:[#allocation6] sm:$0x1] %v161_v29  ;;  %v235_v49 = vmul.f32 %v234_v32, %v564_v33  ;;  %v296_v51 = vmin.f32 %v294_v45, 127.0  ;;  %v350_v53 = vcvt.f32.s32 %v295_v48  ;;  %v103_v54 = vor.u32 1.1754944e-38, %v102_v43 }
  0x3f   :  { %237 = vst [vmem:[#allocation6 - $0x2] sm:$0x8] %v201_v39  ;;  %v94_v52 = vmul.f32 %v376_v28, %v93_v47  ;;  %v348_v55 = vcvt.f32.s32 %v282_v50 }
  0x40   :  { %238 = vst [vmem:[#allocation6 - $0x4] sm:$0x40] %v235_v49  ;;  %v352_v56 = vcvt.f32.s32 %v296_v51 }
  0x41   :  { %v95_v57 = vadd.f32 %v376_v28, %v94_v52  ;;  %299 = vst [vmem:[#allocation5 + $0x4] sm:$0xff] %v350_v53  ;;  %324 = dma.vmem_to_hbm [thread:$0]  %s320_s16, 64, %s322_s19, [#allocation7]  }
  0x42   :  { %284 = vst [vmem:[#allocation5 + $0x2] sm:$0x2] %v348_v55 }
  0x43   :  { %v99_v58 = vsel %vm98_vm7, %v376_v28, %v95_v57  ;;  %300 = vst [vmem:[#allocation5 + $0xc] sm:$0x1] %v352_v56 }
  0x44   :  { %v104_v33 = vsel %vm101_vm8, %v103_v54, %v99_v58 }
  0x45   :  { %v239_v59 = vmul.f32 %v104_v33, %v507_v34  ;;  %v256_v60 = vrot.slane %v104_v33, 7  ;;  %v267_v61 = vrot.slane %v104_v33, 1 }
  0x47   :  { %v336_v62 = vadd.f32 1.0, %v239_v59  ;;  %v258_v63 = vmul.f32 %v256_v60, %v499_v30  ;;  %v269_v0 = vmul.f32 %v267_v61, %v509_v35 }
  0x49   :  { %v248_v2 = vmul.f32 %v336_v62, %v584_v1  ;;  %v337_v3 = vadd.f32 1.0, %v258_v63  ;;  %v338_v5 = vadd.f32 1.0, %v269_v0 }
  0x4b   :  { %v249_v6 = vmul.f32 64.0, %v248_v2  ;;  %v260_v7 = vmul.f32 %v337_v3, %v584_v1  ;;  %v271_v8 = vmul.f32 %v338_v5, %v584_v1 }
  0x4d   :  { %v250_v46 = vfloor.f32 %v249_v6  ;;  %v261_v9 = vmul.f32 64.0, %v260_v7  ;;  %v272_v10 = vmul.f32 64.0, %v271_v8 }
  0x4f   :  { %v251_v34 = vmax.f32 %v250_v46, 0.0  ;;  %v262_v11 = vfloor.f32 %v261_v9  ;;  %v273_v12 = vfloor.f32 %v272_v10 }
  0x51   :  { %v252_v13 = vmin.f32 %v251_v34, 63.0  ;;  %v263_v14 = vmax.f32 %v262_v11, 0.0  ;;  %v274_v30 = vmax.f32 %v273_v12, 0.0 }
  0x53   :  { %v342_v15 = vcvt.f32.s32 %v252_v13  ;;  %v264_v35 = vmin.f32 %v263_v14, 63.0  ;;  %v275_v16 = vmin.f32 %v274_v30, 63.0 }
  0x55   :  { %254 = vst [vmem:[#allocation5 - $0x1] sm:$0x2] %v342_v15  ;;  %v344_v1 = vcvt.f32.s32 %v264_v35  ;;  %v346_v17 = vcvt.f32.s32 %v275_v16 }
  0x57   :  { %266 = vst [vmem:[#allocation5 - $0x1] sm:$0x4] %v344_v1 }
  0x58   :  { %277 = vst [vmem:[#allocation5 + $0x2] sm:$0x1] %v346_v17 }
  0x59   :  { %313 = dma.vmem_to_hbm [thread:$0]  %s306_s20, 256, %s308_s23, [#allocation4], %s456_s14, %s456_s14, %s457_s15  }
  0x5a   :  { %451 = dma.done.wait [#allocation4], 256  }
  0x5b   :  { %452 = vsyncadd [#allocation4], 4294967040 }
  0x5c   :  { %453 = dma.done.wait [#allocation7], 64  }
  0x5d   :  { %454 = vsyncadd [#allocation7], 4294967232 }
  0x5e   :  { %333 = vsyncpa [#allocation3], 1 }
  0x5f   :  { %334 = vsyncpa [#allocation4], 1 }
  0x60   :  { %335 = vsyncpa [#allocation7], 1 }

</bundles_post_ra>
